<compile_context>
chip_gen: v7x
topology: tpu7x:2x2x1
jax: 0.10.0
libtpu: 0.0.40
codegen_flags: <defaults>
</compile_context>

<pallas_src>
import functools
import math

import jax
import jax.numpy as jnp
from jax.experimental import pallas as pl
from jax.experimental.pallas import tpu as pltpu


def _pe_kernel(freq_ref, bias_ref, out_ref, *, rows_per_super):
    # freq_ref: (1, lane) f32  -- per-lane frequency   w_{(L % 2D) // 4}
    # bias_ref: (1, lane) f32  -- (L // 2D) * freq(L) - (L % 2) * pi/2
    # out_ref:  (tile_s, lane) f32, lane = rows_per_super * 2D (lane-dense, >= 512)
    #
    # out[s, L] = cos(row * freq(L) - phase(L)),  row = (tile_base + s) * k + L // 2D
    #           = cos(base_row(s) * freq(L) + bias(L))
    tile_s, lane = out_ref.shape
    srow = jax.lax.broadcasted_iota(jnp.int32, (tile_s, lane), 0)
    base_row = ((pl.program_id(0) * tile_s + srow) * rows_per_super).astype(jnp.float32)
    out_ref[...] = jnp.cos(base_row * freq_ref[...] + bias_ref[...])


def _lcm(a: int, b: int) -> int:
    return a * b // math.gcd(a, b)


def _fold_factor(two_d: int) -> int:
    """Rows folded into the lane axis so lane width is a multiple of 128 and >= 512."""
    if two_d % 128 == 0 and two_d >= 512:
        return 1
    base_k = _lcm(128, two_d) // two_d            # smallest k with k*2D % 128 == 0
    widen = max(1, -(-512 // (base_k * two_d)))   # integer multiple to reach >= 512 lanes
    return base_k * widen


def _pick_tile_s(num_super_rows: int, lane: int) -> int:
    """Super-rows per output block: ~4 MiB per block (8 MiB double-buffered)."""
    bytes_per_row = lane * 4
    target = max(8, ((4 << 20) // bytes_per_row) // 8 * 8)
    if num_super_rows <= target:
        return num_super_rows        # single full block (equal-to-full-dim is legal)
    return target                    # multiple of 8 -> valid sublane block size


def position_encoding(feature: jax.Array, *, tile_s: int | None = None) -> jax.Array:
    """Pallas implementation of Position_Encoding.forward.

    feature: (B, N, D) — only its shape is used (matches the PyTorch module).
    returns: (B, N, D, 2) float32 position code, [..., 0]=cos, [..., 1]=sin.
    """
    bsize, npoint, d = feature.shape
    assert d % 2 == 0, "channel dim must be even"
    assert npoint < (1 << 24), "positions carried in f32; exact only for N < 2^24"
    two_d = 2 * d

    # --- lane-dense folding: k rows per super-row, lane = k*2D (multiple of 128, >=512)
    k = _fold_factor(two_d)
    lane = k * two_d
    n_super = pl.cdiv(npoint, k)                  # distinct super-rows needed (B-independent!)

    if tile_s is None:
        tile_s = _pick_tile_s(n_super, lane)
    num_tiles = pl.cdiv(n_super, tile_s)
    s_out = num_tiles * tile_s                    # pad rows so blocks always divide

    # --- tiny per-lane tables (computed once in the wrapper, resident in VMEM) --------
    # fused lane L -> within-row lane l = L % 2D, folded row offset r = L // 2D
    #   channel c = l//2, component comp = l%2, frequency index j = l//4
    lane_idx = jnp.arange(lane, dtype=jnp.int32)
    l = lane_idx % two_d
    rowoff = (lane_idx // two_d).astype(jnp.float32)
    freq = jnp.exp((l // 4).astype(jnp.float32) * jnp.float32(-2.0 * math.log(10000.0) / d))
    phase = (l % 2).astype(jnp.float32) * jnp.float32(math.pi / 2.0)   # cos(x - pi/2) == sin(x)
    bias = rowoff * freq - phase
    freq = freq.reshape(1, lane)
    bias = bias.reshape(1, lane)

    cost = pl.CostEstimate(
        flops=2 * s_out * lane,
        transcendentals=s_out * lane,
        bytes_accessed=s_out * lane * 4 + 2 * lane * 4,
    )

    small_spec = pl.BlockSpec((1, lane), lambda i: (0, 0))   # resident tables
    slab = pl.pallas_call(
        functools.partial(_pe_kernel, rows_per_super=k),
        out_shape=jax.ShapeDtypeStruct((s_out, lane), jnp.float32),
        grid=(num_tiles,),
        in_specs=[small_spec, small_spec],
        out_specs=pl.BlockSpec((tile_s, lane), lambda i: (i, 0)),
        compiler_params=pltpu.CompilerParams(
            dimension_semantics=("parallel",),
            vmem_limit_bytes=32 * 1024 * 1024,
        ),
        cost_estimate=cost,
    )(freq, bias)

    # Flat element order of the folded slab equals the (row, 2D) order, so this is a
    # free contiguous reshape + slice (drops the k-fold / tile padding rows).
    code = slab.reshape(-1)[: npoint * two_d].reshape(npoint, d, 2)
    # The position code has no batch dependence: broadcast instead of recomputing Bx.
    return jnp.broadcast_to(code[None], (bsize, npoint, d, 2))


def _reference(feature: jax.Array) -> jax.Array:
    """Pure-JAX replica of the PyTorch forward, for verification."""
    bsize, npoint, dim = feature.shape
    position = jnp.arange(npoint, dtype=jnp.float32)[None, :, None]            # (1, N, 1)
    position = jnp.broadcast_to(position, (bsize, npoint, 1))
    div_term = jnp.exp(
        jnp.arange(0, dim, 2, dtype=jnp.float32) * (-math.log(10000.0) / dim)
    ).reshape(1, 1, -1)                                                        # (1, 1, D/2)
    sinx = jnp.sin(position * div_term)                                        # (B, N, D/2)
    cosx = jnp.cos(position * div_term)
    dup = lambda f: jnp.stack([f, f], axis=-1).reshape(bsize, npoint, -1)      # (B, N, D)
    sinx, cosx = dup(sinx), dup(cosx)
    return jnp.stack([cosx, sinx], axis=-1)                                    # (B, N, D, 2)


if __name__ == "__main__":
    key = jax.random.PRNGKey(0)

    # Small shape consistent with the fine transformer's (B, N, D) features.
    B, N, D = 2, 16, 32
    feature = jax.random.normal(key, (B, N, D), dtype=jnp.float32)
    out = jax.block_until_ready(position_encoding(feature))
    ref = _reference(feature)
    assert out.shape == (B, N, D, 2), out.shape
    assert out.dtype == jnp.float32
    assert jnp.allclose(out, ref, atol=5e-5, rtol=1e-5), float(jnp.max(jnp.abs(out - ref)))

    # Second shape exercising row-fold padding (N=100 not a multiple of k=8) and a
    # multi-step grid with a padded last tile (13 super-rows, tile_s=8 -> 2 steps).
    B2, N2, D2 = 3, 100, 32
    feature2 = jax.random.normal(key, (B2, N2, D2), dtype=jnp.float32)
    out2 = jax.block_until_ready(position_encoding(feature2, tile_s=8))
    ref2 = _reference(feature2)
    assert out2.shape == (B2, N2, D2, 2)
    assert jnp.allclose(out2, ref2, atol=5e-5, rtol=1e-5), float(jnp.max(jnp.abs(out2 - ref2)))

    print("KERNEL_OK")
</pallas_src>

<mosaic_0001>
module attributes {stable_mosaic.version = 11 : i64} {
  func.func @_pe_kernel(%arg0: i32, %arg1: memref<1x512xf32, #tpu.memory_space<vmem>>, %arg2: memref<1x512xf32, #tpu.memory_space<vmem>>, %arg3: memref<2x512xf32, #tpu.memory_space<vmem>>) attributes {dimension_semantics = [#tpu.dimension_semantics<parallel>], iteration_bounds = array<i64: 1>, scalar_prefetch = 0 : i64, scratch_operands = 0 : i64, tpu.core_type = #tpu.core_type<tc>, window_params = [{pipeline_mode = #tpu.pipeline_mode<synchronous>, transform_indices = @transform_0, window_bounds = array<i64: 1, 512>}, {pipeline_mode = #tpu.pipeline_mode<synchronous>, transform_indices = @transform_1, window_bounds = array<i64: 1, 512>}, {transform_indices = @transform_2, window_bounds = array<i64: 2, 512>}]} {
    %0 = tpu.iota {dimensions = array<i32: 0>} : vector<2x512xi32>
    %c2_i32 = arith.constant 2 : i32
    %1 = arith.muli %arg0, %c2_i32 : i32
    %2 = vector.broadcast %1 : i32 to vector<2x512xi32>
    %3 = arith.addi %2, %0 : vector<2x512xi32>
    %c8_i32 = arith.constant 8 : i32
    %4 = vector.broadcast %c8_i32 : i32 to vector<2x512xi32>
    %5 = arith.muli %3, %4 : vector<2x512xi32>
    %6 = arith.sitofp %5 : vector<2x512xi32> to vector<2x512xf32>
    %c0 = arith.constant 0 : index
    %c0_0 = arith.constant 0 : index
    %7 = vector.load %arg1[%c0, %c0_0] : memref<1x512xf32, #tpu.memory_space<vmem>>, vector<1x512xf32>
    %8 = vector.broadcast %7 : vector<1x512xf32> to vector<2x512xf32>
    %9 = arith.mulf %6, %8 : vector<2x512xf32>
    %c0_1 = arith.constant 0 : index
    %c0_2 = arith.constant 0 : index
    %10 = vector.load %arg2[%c0_1, %c0_2] : memref<1x512xf32, #tpu.memory_space<vmem>>, vector<1x512xf32>
    %11 = vector.broadcast %10 : vector<1x512xf32> to vector<2x512xf32>
    %12 = arith.addf %9, %11 : vector<2x512xf32>
    %13 = math.cos %12 : vector<2x512xf32>
    %c0_3 = arith.constant 0 : index
    %c0_4 = arith.constant 0 : index
    %14 = vector.load %arg3[%c0_3, %c0_4] : memref<2x512xf32, #tpu.memory_space<vmem>>, vector<2x512xf32>
    tpu.vector_store %arg3[%c0_3, %c0_4], %13 {strides = array<i32>} : memref<2x512xf32, #tpu.memory_space<vmem>>, vector<2x512xf32>,
    return
  }
  func.func @transform_0(%arg0: i32) -> (i32, i32) {
    %c0_i32 = arith.constant 0 : i32
    %c0_i32_0 = arith.constant 0 : i32
    %c0_i32_1 = arith.constant 0 : i32
    return %c0_i32, %c0_i32_0 : i32, i32
  }
  func.func @transform_1(%arg0: i32) -> (i32, i32) {
    %c0_i32 = arith.constant 0 : i32
    %c0_i32_0 = arith.constant 0 : i32
    %c0_i32_1 = arith.constant 0 : i32
    return %c0_i32, %c0_i32_0 : i32, i32
  }
  func.func @transform_2(%arg0: i32) -> (i32, i32) {
    %c0_i32 = arith.constant 0 : i32
    %c0_i32_0 = arith.constant 0 : i32
    return %arg0, %c0_i32 : i32, i32
  }
}

</mosaic_0001>

<bundles_post_ra>
// kernel: tpu_custom_call.1
= control target key start
LH: loop header
LB: loop body
LE: loop exit
PB: predicated region body
PF: predicated region fallthrough
CT: control target
= control target key end

     0   :  { %7 = vsyncpa [#allocation3], 0  ;;  %s1035_s0 = inlined_call_operand.hbm [shape: f32[1,512], index: 0, kind: input, shape index: {}]   ;;  %s1036_s1 = inlined_call_operand.hbm [shape: f32[1,512], index: 1, kind: input, shape index: {}]   ;;  %s1037_s2 = inlined_call_operand.hbm [shape: f32[2,512], index: 2, kind: output, shape index: {}]  }
   0x1   :  { %8 = vsyncpa [#allocation6], 0 }
   0x2   :  { %9 = vsyncpa [#allocation4], 0  ;;  %s676_s9 = smov [#allocation2]   ;;  %s677_s11 = smov [#allocation5]  }
   0x3   :  { %s16_s10 = sshll.u32 %s676_s9, 4  ;;  %s26_s12 = sshll.u32 %s677_s11, 4  ;;  %s17_s10 = int_to_ptr.vmem [resolvable:$true] %s16_s10  ;;  %s27_s12 = int_to_ptr.vmem [resolvable:$true] %s26_s12 }
   0x4   :  { %s604_s15 = scalar_lea.hbm %s1035_s0, 64 }
   0x5   :  { %p605_p0 = scmp.ne.s32.totalorder %s1035_s0, %s604_s15  ;;  %p608_p1 = scmp.lt.u32.totalorder %s604_s15, %s1035_s0 }
   0x7   :  { %p610_p2 = pnand %p608_p1, %p605_p0 }
   0x9   :  { %613 = shalt.err (!%p610_p2)
}
   0xa   :  { %s614_s20 = scalar_lea.vmem %s17_s10, 64  ;;  %p619_p4 = scmp.lt.s32.totalorder %s17_s10, %s17_s10 }
   0xb   :  { %p615_p3 = scmp.ne.s32.totalorder %s17_s10, %s614_s20  ;;  %p620_p5 = scmp.lt.s32.totalorder %s614_s20, %s614_s20 }
   0xd   :  { %p621_p6 = por %p620_p5, %p619_p4 }
   0xf   :  { %p622_p7 = pnand %p621_p6, %p615_p3 }
  0x11   :  { %625 = shalt.err (!%p622_p7)
}
  0x12   :  { %19 = dma.hbm_to_vmem [thread:$0]  %s1035_s0, 64, %s17_s10, [#allocation3]  }
  0x13   :  { %s626_s25 = scalar_lea.hbm %s1036_s1, 64 }
  0x14   :  { %p627_p8 = scmp.ne.s32.totalorder %s1036_s1, %s626_s25  ;;  %p630_p9 = scmp.lt.u32.totalorder %s626_s25, %s1036_s1 }
  0x16   :  { %p632_p10 = pnand %p630_p9, %p627_p8 }
  0x18   :  { %635 = shalt.err (!%p632_p10)
}
  0x19   :  { %s636_s30 = scalar_lea.vmem %s27_s12, 64  ;;  %p641_p12 = scmp.lt.s32.totalorder %s27_s12, %s27_s12 }
  0x1a   :  { %p637_p11 = scmp.ne.s32.totalorder %s27_s12, %s636_s30  ;;  %p642_p13 = scmp.lt.s32.totalorder %s636_s30, %s636_s30 }
  0x1c   :  { %p643_p0 = por %p642_p13, %p641_p12 }
  0x1e   :  { %p644_p1 = pnand %p643_p0, %p637_p11 }
  0x20   :  { %647 = shalt.err (!%p644_p1)
}
  0x21   :  { %29 = dma.hbm_to_vmem [thread:$0]  %s1036_s1, 64, %s27_s12, [#allocation6]  }
  0x22   :  { %670 = dma.done.wait [#allocation3], 64  }
  0x23   :  { %671 = vsyncadd [#allocation3], 4294967232 }
  0x24   :  { %672 = dma.done.wait [#allocation6], 64  }
  0x25   :  { %673 = vsyncadd [#allocation6], 4294967232  ;;  %v36_v0 = vlaneseq  ;;  %v43_v7 = vld [vmem:[#allocation2] sm:$0xf]  ;;  %v69_v8 = vld [vmem:[#allocation5] sm:$0xf] }
  0x26   :  { %v678_v51 = vmov 683565275   ;;  %v679_v53 = vmov 2475754826   ;;  %v680_v55 = vmov 2131351028  }
  0x27   :  { %v725_v1 = vshrl.u32 %v36_v0, 7  ;;  %v681_v57 = vmov 2102212464   ;;  %v682_v59 = vmov 920167782   ;;  %s685_s1 = smov [#allocation7]  }
  0x28   :  { %s536_s4 = sshll.u32 %s685_s1, 4  ;;  %s537_s4 = int_to_ptr.vmem [resolvable:$true] %s536_s4 }
  0x29   :  { %v41_v2 = vmul.u32 8, %v725_v1  ;;  %v47_v3 = vsub.s32 0, %v725_v1  ;;  %v51_v4 = vsub.s32 1, %v725_v1  ;;  %v55_v5 = vsub.s32 2, %v725_v1  ;;  %s648_s5 = scalar_lea.vmem %s537_s4, 128  ;;  %p653_p3 = scmp.lt.s32.totalorder %s537_s4, %s537_s4 }
  0x2a   :  { %v59_v25 = vsub.s32 3, %v725_v1  ;;  %p649_p2 = scmp.ne.s32.totalorder %s537_s4, %s648_s5  ;;  %p654_p4 = scmp.lt.s32.totalorder %s648_s5, %s648_s5 }
  0x2b   :  { %v42_v6 = vcvt.s32.f32 %v41_v2  ;;  %v48_v9 = vrot.slane %v43_v7, %v47_v3  ;;  %v52_v10 = vrot.slane %v43_v7, %v51_v4  ;;  %v56_v11 = vrot.slane %v43_v7, %v55_v5 }
  0x2c   :  { %v74_v12 = vrot.slane %v69_v8, %v47_v3  ;;  %v78_v13 = vrot.slane %v69_v8, %v51_v4  ;;  %v82_v14 = vrot.slane %v69_v8, %v55_v5  ;;  %v60_v34 = vrot.slane %v43_v7, %v59_v25  ;;  %p655_p5 = por %p654_p4, %p653_p3 }
  0x2d   :  { %v65_v15 = vmul.f32 %v48_v9, %v42_v6  ;;  %v66_v16 = vmul.f32 %v52_v10, %v42_v6  ;;  %v67_v17 = vmul.f32 %v56_v11, %v42_v6  ;;  %v747_v40 = vrot.slane %v69_v8, %v59_v25 }
  0x2e   :  { %v749_v42 = vmul.f32 %v60_v34, %v42_v6  ;;  %v683_v4 = vmov 1326507024   ;;  %p656_p6 = pnand %p655_p5, %p649_p2 }
  0x2f   :  { %v731_v18 = vadd.f32 %v74_v12, %v65_v15  ;;  %v733_v19 = vadd.f32 %v78_v13, %v66_v16  ;;  %v735_v20 = vadd.f32 %v82_v14, %v67_v17 }
  0x31   :  { %v95_v21 = vand.u32 2147483647, %v731_v18  ;;  %v98_v22 = vand.u32 2139095040, %v731_v18  ;;  %v198_v23 = vand.u32 2147483647, %v733_v19  ;;  %v201_v24 = vand.u32 2139095040, %v733_v19 }
  0x32   :  { %v304_v30 = vand.u32 2139095040, %v735_v20 }
  0x33   :  { %v99_v26 = vshrl.u32 %v98_v22, 23  ;;  %v102_v27 = vand.u32 8388607, %v95_v21  ;;  %v202_v28 = vshrl.u32 %v201_v24, 23  ;;  %v205_v29 = vand.u32 8388607, %v198_v23 }
  0x34   :  { %v305_v33 = vshrl.u32 %v304_v30, 23 }
  0x35   :  { %v546_v31 = vadd.s32 4294967169, %v99_v26  ;;  %v550_v32 = vadd.s32 4294967169, %v202_v28  ;;  %v103_v36 = vor.u32 8388608, %v102_v27  ;;  %v206_v37 = vor.u32 8388608, %v205_v29 }
  0x36   :  { %v554_v39 = vadd.s32 4294967169, %v305_v33 }
  0x37   :  { %v105_v35 = vadd.s32 1, %v546_v31  ;;  %v208_v38 = vadd.s32 1, %v550_v32  ;;  %v751_v46 = vshll.u32 %v103_v36, 8  ;;  %v753_v48 = vshll.u32 %v206_v37, 8 }
  0x38   :  { %v755_v49 = vadd.s32 1, %v554_v39 }
  0x39   :  { %vm106_vm0 = vcmp.gt.s32.totalorder %v105_v35, 0  ;;  %vm209_vm1 = vcmp.gt.s32.totalorder %v208_v38, 0 }
  0x3a   :  { %v107_v41 = vsel %vm106_vm0, %v105_v35, 0  ;;  %v210_v45 = vsel %vm209_vm1, %v208_v38, 0  ;;  %vm312_vm6 = vcmp.gt.s32.totalorder %v755_v49, 0 }
  0x3b   :  { %v108_v43 = vshrl.u32 %v107_v41, 5  ;;  %v109_v44 = vand.u32 31, %v107_v41  ;;  %v212_v47 = vand.u32 31, %v210_v45  ;;  %v762_v61 = vshrl.u32 %v210_v45, 5 }
  0x3d   :  { %v110_v50 = vsub.s32 32, %v109_v44  ;;  %v112_v52 = vshll.u32 %v678_v51, %v109_v44  ;;  %v115_v54 = vshll.u32 %v679_v53, %v109_v44  ;;  %v118_v56 = vshll.u32 %v680_v55, %v109_v44 }
  0x3e   :  { %v121_v58 = vshll.u32 %v681_v57, %v109_v44  ;;  %v124_v60 = vshll.u32 %v682_v59, %v109_v44  ;;  %vm127_vm2 = vcmp.lt.s32.totalorder %v108_v43, 1  ;;  %vm128_vm3 = vcmp.lt.s32.totalorder %v108_v43, 2 }
  0x3f   :  { %v111_v62 = vshrl.u32 %v678_v51, %v110_v50  ;;  %v113_v63 = vshrl.u32 %v679_v53, %v110_v50  ;;  %v116_v0 = vshrl.u32 %v680_v55, %v110_v50  ;;  %v119_v2 = vshrl.u32 %v681_v57, %v110_v50 }
  0x40   :  { %v122_v3 = vshrl.u32 %v682_v59, %v110_v50  ;;  %v125_v5 = vshrl.u32 %v683_v4, %v110_v50  ;;  %vm130_vm4 = vcmp.lt.s32.totalorder %v108_v43, 4  ;;  %v213_v9 = vsub.s32 32, %v212_v47 }
  0x41   :  { %v114_v6 = vor.u32 %v113_v63, %v112_v52  ;;  %v117_v7 = vor.u32 %v116_v0, %v115_v54  ;;  %v120_v8 = vor.u32 %v119_v2, %v118_v56  ;;  %vm129_vm5 = vcmp.lt.s32.totalorder %v108_v43, 3 }
  0x42   :  { %v123_v10 = vor.u32 %v122_v3, %v121_v58  ;;  %v126_v11 = vor.u32 %v125_v5, %v124_v60  ;;  %v215_v12 = vshll.u32 %v678_v51, %v212_v47  ;;  %v218_v25 = vshll.u32 %v679_v53, %v212_v47 }
  0x43   :  { %v131_v13 = vsel %vm127_vm2, %v111_v62, %v114_v6  ;;  %v132_v14 = vsel %vm130_vm4, %v120_v8, 2102212464  ;;  %v135_v15 = vsel %vm127_vm2, %v114_v6, %v117_v7  ;;  %v139_v16 = vsel %vm127_vm2, %v117_v7, %v120_v8 }
  0x44   :  { %v133_v17 = vsel %vm129_vm5, %v117_v7, %v132_v14  ;;  %v136_v22 = vsel %vm130_vm4, %v123_v10, 920167782  ;;  %v140_v24 = vsel %vm130_vm4, %v126_v11, 1326507024  ;;  %v214_v28 = vshrl.u32 %v678_v51, %v213_v9 }
  0x45   :  { %v137_v26 = vsel %vm129_vm5, %v120_v8, %v136_v22  ;;  %v141_v27 = vsel %vm129_vm5, %v123_v10, %v140_v24  ;;  %v216_v29 = vshrl.u32 %v679_v53, %v213_v9  ;;  %v134_v30 = vsel %vm128_vm3, %v131_v13, %v133_v17 }
  0x46   :  { %v138_v31 = vsel %vm128_vm3, %v135_v15, %v137_v26  ;;  %v142_v32 = vsel %vm128_vm3, %v139_v16, %v141_v27  ;;  %v219_v33 = vshrl.u32 %v680_v55, %v213_v9  ;;  %v221_v41 = vshll.u32 %v680_v55, %v212_v47 }
  0x47   :  { %v783_v34 = vmul.u32.u64.low %v751_v46, %v142_v32  ;;  %v784_v35 = vmul.u32.u64.high %v751_v46, %v142_v32, %v783_v34  ;;  %v787_v36 = vmul.u32.u64.low %v751_v46, %v138_v31  ;;  %v788_v37 = vmul.u32.u64.high %v751_v46, %v138_v31, %v787_v36 }
  0x48   :  { %v217_v38 = vor.u32 %v216_v29, %v215_v12  ;;  %v220_v39 = vor.u32 %v219_v33, %v218_v25  ;;  %v222_v44 = vshrl.u32 %v681_v57, %v213_v9  ;;  %v224_v43 = vshll.u32 %v681_v57, %v212_v47 }
  0x49   :  { %v225_v45 = vshrl.u32 %v682_v59, %v213_v9  ;;  %v227_v50 = vshll.u32 %v682_v59, %v212_v47  ;;  %v228_v52 = vshrl.u32 %v683_v4, %v213_v9  ;;  %v150_v54 = vmul.u32 %v751_v46, %v134_v30 }
  0x4a   :  { %v223_v56 = vor.u32 %v222_v44, %v221_v41  ;;  %vm230_vm7 = vcmp.lt.s32.totalorder %v762_v61, 1  ;;  %vm231_vm8 = vcmp.lt.s32.totalorder %v762_v61, 2  ;;  %vm152_vm9 = vc.u32 %v784_v35, %v787_v36 }
  0x4b   :  { %v153_v58 = vadd.s32 1, %v788_v37  ;;  %v226_v60 = vor.u32 %v225_v45, %v224_v43  ;;  %vm232_vm10 = vcmp.lt.s32.totalorder %v762_v61, 3  ;;  %v229_v62 = vor.u32 %v228_v52, %v227_v50 }
  0x4c   :  { %vm233_vm11 = vcmp.lt.s32.totalorder %v762_v61, 4  ;;  %v234_v47 = vsel %vm230_vm7, %v214_v28, %v217_v38  ;;  %v238_v63 = vsel %vm230_vm7, %v217_v38, %v220_v39  ;;  %v242_v3 = vsel %vm230_vm7, %v220_v39, %v223_v56 }
  0x4d   :  { %v154_v46 = vsel %vm152_vm9, %v153_v58, %v788_v37  ;;  %v235_v0 = vsel %vm233_vm11, %v223_v56, 2102212464  ;;  %v239_v2 = vsel %vm233_vm11, %v226_v60, 920167782  ;;  %v243_v8 = vsel %vm233_vm11, %v229_v62, 1326507024 }
  0x4e   :  { %v155_v5 = vadd.s32 %v154_v46, %v150_v54  ;;  %v236_v6 = vsel %vm232_vm10, %v220_v39, %v235_v0  ;;  %v240_v7 = vsel %vm232_vm10, %v223_v56, %v239_v2  ;;  %v244_v11 = vsel %vm232_vm10, %v226_v60, %v243_v8 }
  0x4f   :  { %v237_v9 = vsel %vm231_vm8, %v234_v47, %v236_v6  ;;  %v241_v10 = vsel %vm231_vm8, %v238_v63, %v240_v7  ;;  %v313_v12 = vsel %vm312_vm6, %v755_v49, 0  ;;  %v245_v14 = vsel %vm231_vm8, %v242_v3, %v244_v11 }
  0x50   :  { %v156_v13 = vadd.s32 536870912, %v155_v5  ;;  %v816_v15 = vmul.u32.u64.low %v753_v48, %v241_v10  ;;  %v817_v16 = vmul.u32.u64.high %v753_v48, %v241_v10, %v816_v15  ;;  %v826_v24 = vadd.f32 %v747_v40, %v749_v42 }
  0x51   :  { %v821_v17 = vmul.u32.u64.low %v753_v48, %v245_v14  ;;  %v822_v22 = vmul.u32.u64.high %v753_v48, %v245_v14, %v821_v17  ;;  %v301_v49 = vand.u32 2147483647, %v735_v20  ;;  %v315_v26 = vand.u32 31, %v313_v12 }
  0x52   :  { %v828_v25 = vshrl.u32 %v156_v13, 30  ;;  %v253_v61 = vmul.u32 %v753_v48, %v237_v9  ;;  %v256_v27 = vadd.s32 1, %v817_v16  ;;  %v314_v42 = vshrl.u32 %v313_v12, 5 }
  0x53   :  { %v316_v28 = vsub.s32 32, %v315_v26  ;;  %vm255_vm12 = vc.u32 %v822_v22, %v816_v15  ;;  %v308_v40 = vand.u32 8388607, %v301_v49  ;;  %v407_v31 = vand.u32 2139095040, %v826_v24 }
  0x54   :  { %v158_v29 = vshll.u32 %v828_v25, 30  ;;  %v257_v30 = vsel %vm255_vm12, %v256_v27, %v817_v16  ;;  %v318_v33 = vshll.u32 %v678_v51, %v315_v26  ;;  %v321_v48 = vshll.u32 %v679_v53, %v315_v26 }
  0x55   :  { %v258_v32 = vadd.s32 %v257_v30, %v253_v61  ;;  %v319_v34 = vshrl.u32 %v679_v53, %v316_v28  ;;  %v322_v37 = vshrl.u32 %v680_v55, %v316_v28  ;;  %v324_v38 = vshll.u32 %v680_v55, %v315_v26 }
  0x56   :  { %v325_v39 = vshrl.u32 %v681_v57, %v316_v28  ;;  %v846_v41 = vsub.s32 %v155_v5, %v158_v29  ;;  %v327_v43 = vshll.u32 %v681_v57, %v315_v26  ;;  %v309_v45 = vor.u32 8388608, %v308_v40 }
  0x57   :  { %v259_v44 = vadd.s32 536870912, %v258_v32  ;;  %vm333_vm13 = vcmp.lt.s32.totalorder %v314_v42, 1  ;;  %v408_v50 = vshrl.u32 %v407_v31, 23  ;;  %v328_v54 = vshrl.u32 %v682_v59, %v316_v28 }
  0x58   :  { %v330_v56 = vshll.u32 %v682_v59, %v315_v26  ;;  %vm336_vm14 = vcmp.lt.s32.totalorder %v314_v42, 4  ;;  %v320_v58 = vor.u32 %v319_v34, %v318_v33  ;;  %v323_v60 = vor.u32 %v322_v37, %v321_v48 }
  0x59   :  { %v849_v52 = vshrl.u32 %v259_v44, 30  ;;  %v326_v62 = vor.u32 %v325_v39, %v324_v38  ;;  %v331_v47 = vshrl.u32 %v683_v4, %v316_v28  ;;  %v161_v63 = vsub.s32 0, %v846_v41 }
  0x5a   :  { %v329_v0 = vor.u32 %v328_v54, %v327_v43  ;;  %vm335_vm15 = vcmp.lt.s32.totalorder %v314_v42, 3  ;;  %v317_v5 = vshrl.u32 %v678_v51, %v316_v28  ;;  %vm334_vm0 = vcmp.lt.s32.totalorder %v314_v42, 2 }
  0x5b   :  { %v261_v46 = vshll.u32 %v849_v52, 30  ;;  %v332_v2 = vor.u32 %v331_v47, %v330_v56  ;;  %v338_v7 = vsel %vm336_vm14, %v326_v62, 2102212464  ;;  %v341_v8 = vsel %vm333_vm13, %v320_v58, %v323_v60 }
  0x5c   :  { %v342_v6 = vsel %vm336_vm14, %v329_v0, 920167782  ;;  %v547_v11 = vmin.u32 %v161_v63, %v846_v41  ;;  %v345_v12 = vsel %vm333_vm13, %v323_v60, %v326_v62  ;;  %v349_v13 = vshll.u32 %v309_v45, 8 }
  0x5d   :  { %v856_v3 = vsub.s32 %v258_v32, %v261_v46  ;;  %v343_v9 = vsel %vm335_vm15, %v326_v62, %v342_v6  ;;  %v346_v10 = vsel %vm336_vm14, %v332_v2, 1326507024  ;;  %v558_v14 = vadd.s32 4294967169, %v408_v50 }
  0x5e   :  { %v347_v17 = vsel %vm335_vm15, %v329_v0, %v346_v10  ;;  %v337_v26 = vsel %vm333_vm13, %v317_v5, %v320_v58  ;;  %v339_v61 = vsel %vm335_vm15, %v323_v60, %v338_v7  ;;  %v344_v27 = vsel %vm334_vm0, %v341_v8, %v343_v9 }
  0x5f   :  { %v264_v16 = vsub.s32 0, %v856_v3  ;;  %v348_v28 = vsel %vm334_vm0, %v345_v12, %v347_v17  ;;  %v163_v29 = vclz %v547_v11  ;;  %v414_v31 = vadd.s32 1, %v558_v14 }
  0x60   :  { %v872_v30 = vmul.u32.u64.low %v349_v13, %v348_v28  ;;  %v873_v40 = vmul.u32.u64.high %v349_v13, %v348_v28, %v872_v30  ;;  %v340_v33 = vsel %vm334_vm0, %v337_v26, %v339_v61  ;;  %v404_v45 = vand.u32 2147483647, %v826_v24 }
  0x61   :  { %v551_v32 = vmin.u32 %v264_v16, %v856_v3  ;;  %v877_v48 = vmul.u32.u64.low %v349_v13, %v344_v27  ;;  %v878_v34 = vmul.u32.u64.high %v349_v13, %v344_v27, %v877_v48  ;;  %vm415_vm1 = vcmp.gt.s32.totalorder %v414_v31, 0 }
  0x62   :  { %v416_v37 = vsel %vm415_vm1, %v414_v31, 0  ;;  %v548_v38 = vadd.s32 4294967294, %v163_v29  ;;  %v356_v39 = vmul.u32 %v349_v13, %v340_v33  ;;  %v411_v60 = vand.u32 8388607, %v404_v45 }
  0x63   :  { %vm358_vm2 = vc.u32 %v873_v40, %v877_v48  ;;  %v266_v44 = vclz %v551_v32  ;;  %v359_v43 = vadd.s32 1, %v878_v34  ;;  %v418_v50 = vand.u32 31, %v416_v37 }
  0x64   :  { %vm549_vm3 = vcmp.lt.s32.totalorder %v548_v38, 0  ;;  %v151_v46 = vadd.s32 %v787_v36, %v784_v35  ;;  %v417_v7 = vshrl.u32 %v416_v37, 5  ;;  %v412_v10 = vor.u32 8388608, %v411_v60 }
  0x65   :  { %v360_v42 = vsel %vm358_vm2, %v359_v43, %v878_v34  ;;  %v419_v54 = vsub.s32 32, %v418_v50  ;;  %v552_v58 = vadd.s32 4294967294, %v266_v44  ;;  %v421_v47 = vshll.u32 %v678_v51, %v418_v50 }
  0x66   :  { %v361_v56 = vadd.s32 %v360_v42, %v356_v39  ;;  %v892_v0 = vsel %vm549_vm3, 0, %v548_v38  ;;  %v424_v2 = vshll.u32 %v679_v53, %v418_v50  ;;  %v427_v8 = vshll.u32 %v680_v55, %v418_v50 }
  0x67   :  { %v422_v63 = vshrl.u32 %v679_v53, %v419_v54  ;;  %v425_v5 = vshrl.u32 %v680_v55, %v419_v54  ;;  %v428_v9 = vshrl.u32 %v681_v57, %v419_v54  ;;  %vm553_vm4 = vcmp.lt.s32.totalorder %v552_v58, 0 }
  0x68   :  { %v362_v62 = vadd.s32 536870912, %v361_v56  ;;  %v430_v11 = vshll.u32 %v681_v57, %v418_v50  ;;  %v431_v12 = vshrl.u32 %v682_v59, %v419_v54  ;;  %v167_v35 = vsub.s32 32, %v892_v0 }
  0x69   :  { %v171_v36 = vsub.s32 4294967266, %v892_v0  ;;  %v423_v13 = vor.u32 %v422_v63, %v421_v47  ;;  %v426_v14 = vor.u32 %v425_v5, %v424_v2  ;;  %v433_v17 = vshll.u32 %v682_v59, %v418_v50 }
  0x6a   :  { %v896_v6 = vshrl.u32 %v362_v62, 30  ;;  %v432_v16 = vor.u32 %v431_v12, %v430_v11  ;;  %v434_v55 = vshrl.u32 %v683_v4, %v419_v54  ;;  %v269_v26 = vsel %vm553_vm4, 0, %v552_v58 }
  0x6b   :  { %v429_v27 = vor.u32 %v428_v9, %v427_v8  ;;  %vm436_vm5 = vcmp.lt.s32.totalorder %v417_v7, 1  ;;  %v254_v57 = vadd.s32 %v816_v15, %v822_v22  ;;  %v420_v28 = vshrl.u32 %v678_v51, %v419_v54 }
  0x6c   :  { %v364_v53 = vshll.u32 %v896_v6, 30  ;;  %vm439_vm6 = vcmp.lt.s32.totalorder %v417_v7, 4  ;;  %v452_v29 = vshll.u32 %v412_v10, 8  ;;  %v435_v31 = vor.u32 %v434_v55, %v433_v17 }
  0x6d   :  { %vm438_vm7 = vcmp.lt.s32.totalorder %v417_v7, 3  ;;  %v441_v59 = vsel %vm439_vm6, %v429_v27, 2102212464  ;;  %v274_v32 = vsub.s32 4294967266, %v269_v26  ;;  %vm437_vm8 = vcmp.lt.s32.totalorder %v417_v7, 2 }
  0x6e   :  { %v907_v61 = vsub.s32 %v361_v56, %v364_v53  ;;  %v444_v4 = vsel %vm436_vm5, %v423_v13, %v426_v14  ;;  %v445_v33 = vsel %vm439_vm6, %v432_v16, 920167782  ;;  %v168_v34 = vshll.u32 %v846_v41, %v892_v0 }
  0x6f   :  { %v169_v15 = vshrl.u32 %v151_v46, %v167_v35  ;;  %v172_v22 = vadd.s32 127, %v171_v36  ;;  %v440_v37 = vsel %vm436_vm5, %v420_v28, %v423_v13  ;;  %v442_v38 = vsel %vm438_vm7, %v426_v14, %v441_v59 }
  0x70   :  { %v367_v30 = vsub.s32 0, %v907_v61  ;;  %v446_v39 = vsel %vm438_vm7, %v429_v27, %v445_v33  ;;  %v448_v44 = vsel %vm436_vm5, %v426_v14, %v429_v27  ;;  %v270_v43 = vsub.s32 32, %v269_v26 }
  0x71   :  { %v447_v42 = vsel %vm437_vm8, %v444_v4, %v446_v39  ;;  %v449_v54 = vsel %vm439_vm6, %v435_v31, 1326507024  ;;  %v275_v56 = vadd.s32 127, %v274_v32  ;;  %v173_v62 = vshll.u32 %v172_v22, 23 }
  0x72   :  { %v555_v51 = vmin.u32 %v367_v30, %v907_v61  ;;  %v450_v41 = vsel %vm438_vm7, %v432_v16, %v449_v54  ;;  %v926_v58 = vmul.u32.u64.low %v452_v29, %v447_v42  ;;  %v927_v60 = vmul.u32.u64.high %v452_v29, %v447_v42, %v926_v58 }
  0x73   :  { %v443_v63 = vsel %vm437_vm8, %v440_v37, %v442_v38  ;;  %v451_v46 = vsel %vm437_vm8, %v448_v44, %v450_v41  ;;  %v271_v5 = vshll.u32 %v856_v3, %v269_v26  ;;  %v272_v8 = vshrl.u32 %v254_v57, %v270_v43 }
  0x74   :  { %v369_v50 = vclz %v555_v51  ;;  %v931_v0 = vmul.u32.u64.low %v452_v29, %v451_v46  ;;  %v932_v2 = vmul.u32.u64.high %v452_v29, %v451_v46, %v931_v0  ;;  %v357_v9 = vadd.s32 %v877_v48, %v873_v40 }
  0x75   :  { %v276_v10 = vshll.u32 %v275_v56, 23  ;;  %v459_v12 = vmul.u32 %v452_v29, %v443_v63  ;;  %v462_v35 = vadd.s32 1, %v927_v60  ;;  %v170_v36 = vor.u32 %v169_v15, %v168_v34 }
  0x76   :  { %v556_v47 = vadd.s32 4294967294, %v369_v50  ;;  %v174_v53 = vor.u32 4788187, %v173_v62  ;;  %vm461_vm10 = vc.u32 %v932_v2, %v926_v58  ;;  %v273_v14 = vor.u32 %v272_v8, %v271_v5 }
  0x77   :  { %v463_v3 = vsel %vm461_vm10, %v462_v35, %v927_v60  ;;  %v277_v17 = vor.u32 4788187, %v276_v10  ;;  %v177_v27 = vcvt.s32.f32 %v170_v36  ;;  %vm97_vm11 = vcmp.lt.s32.totalorder %v731_v18, 0 }
  0x78   :  { %vm557_vm9 = vcmp.lt.s32.totalorder %v556_v47, 0  ;;  %v464_v48 = vadd.s32 %v463_v3, %v459_v12  ;;  %v175_v26 = vand.u32 2147483647, %v174_v53  ;;  %v280_v29 = vcvt.s32.f32 %v273_v14 }
  0x79   :  { %v372_v11 = vsel %vm557_vm9, 0, %v556_v47  ;;  %v278_v30 = vand.u32 2147483647, %v277_v17  ;;  %vm947_vm12 = vcmp.le.f32.partialorder %v95_v21, 0.7853982  ;;  %vm200_vm13 = vcmp.lt.s32.totalorder %v733_v19, 0 }
  0x7a   :  { %v373_v13 = vsub.s32 32, %v372_v11  ;;  %v377_v7 = vsub.s32 4294967266, %v372_v11  ;;  %v374_v55 = vshll.u32 %v907_v61, %v372_v11  ;;  %v465_v28 = vadd.s32 536870912, %v464_v48 }
  0x7b   :  { %v178_v4 = vmul.f32 %v177_v27, %v175_v26  ;;  %v281_v34 = vmul.f32 %v280_v29, %v278_v30  ;;  %vm956_vm14 = vcmp.le.f32.partialorder %v198_v23, 0.7853982  ;;  %vm303_vm15 = vcmp.lt.s32.totalorder %v735_v20, 0 }
  0x7c   :  { %v378_v16 = vadd.s32 127, %v377_v7  ;;  %v375_v40 = vshrl.u32 %v357_v9, %v373_v13  ;;  %v941_v32 = vshrl.u32 %v465_v28, 30  ;;  %vm968_vm0 = vcmp.le.f32.partialorder %v301_v49, 0.7853982 }
  0x7d   :  { %v179_v61 = vxor.u32 2147483648, %v178_v4  ;;  %v282_v38 = vxor.u32 2147483648, %v281_v34  ;;  %v460_v23 = vadd.s32 %v926_v58, %v932_v2  ;;  %v181_v47 = vsub.s32 4, %v828_v25 }
  0x7e   :  { %v379_v57 = vshll.u32 %v378_v16, 23  ;;  %v376_v31 = vor.u32 %v375_v40, %v374_v55  ;;  %v467_v33 = vshll.u32 %v941_v32, 30  ;;  %v284_v58 = vsub.s32 4, %v849_v52 }
  0x7f   :  { %v180_v50 = vsel %vm97_vm11, %v179_v61, %v178_v4  ;;  %v283_v21 = vsel %vm200_vm13, %v282_v38, %v281_v34  ;;  %v182_v11 = vsel %vm97_vm11, %v181_v47, %v828_v25  ;;  %v387_v14 = vsub.s32 4, %v896_v6 }
  0x80   :  { %v380_v59 = vor.u32 4788187, %v379_v57  ;;  %v383_v22 = vcvt.s32.f32 %v376_v31  ;;  %v468_v51 = vsub.s32 %v464_v48, %v467_v33  ;;  %v183_v56 = vsel %vm947_vm12, %v731_v18, %v180_v50 }
  0x81   :  { %588 = vcosq.f32 %v183_v56  ;;  %v286_v63 = vsel %vm956_vm14, %v733_v19, %v283_v21  ;;  %v184_v13 = vsel %vm947_vm12, 0, %v182_v11  ;;  %v285_v7 = vsel %vm200_vm13, %v284_v58, %v849_v52 }
  0x82   :  { %v381_v15 = vand.u32 2147483647, %v380_v59  ;;  %v470_v37 = vsub.s32 0, %v468_v51  ;;  %590 = vsinq.f32 %v183_v56  ;;  %v188_v17 = vand.u32 3, %v184_v13 }
  0x83   :  { %592 = vcosq.f32 %v286_v63  ;;  %v287_v25 = vsel %vm956_vm14, 0, %v285_v7  ;;  %v388_v48 = vsel %vm303_vm15, %v387_v14, %v896_v6  ;;  %vm406_vm2 = vcmp.lt.s32.totalorder %v826_v24, 0 }
  0x84   :  { %v384_v39 = vmul.f32 %v383_v22, %v381_v15  ;;  %v559_v44 = vmin.u32 %v470_v37, %v468_v51  ;;  %594 = vsinq.f32 %v286_v63  ;;  %vm1000_vm3 = vcmp.le.f32.partialorder %v404_v45, 0.7853982 }
  0x85   :  { %v490_v57 = vsub.s32 4, %v941_v32  ;;  %v291_v29 = vand.u32 3, %v287_v25  ;;  %vm190_vm4 = vcmp.eq.s32.totalorder %v188_v17, 0  ;;  %v390_v30 = vsel %vm968_vm0, 0, %v388_v48 }
  0x86   :  { %v472_v42 = vclz %v559_v44  ;;  %v385_v41 = vxor.u32 2147483648, %v384_v39  ;;  %vm193_vm5 = vcmp.eq.s32.totalorder %v188_v17, 2  ;;  %vm189_vm8 = vcmp.lt.s32.totalorder %v188_v17, 2 }
  0x87   :  { %v491_v15 = vsel %vm406_vm2, %v490_v57, %v941_v32  ;;  %vm293_vm6 = vcmp.eq.s32.totalorder %v291_v29, 0  ;;  %vm296_vm7 = vcmp.eq.s32.totalorder %v291_v29, 2  ;;  %vm292_vm9 = vcmp.lt.s32.totalorder %v291_v29, 2 }
  0x88   :  { %v560_v60 = vadd.s32 4294967294, %v472_v42  ;;  %v386_v0 = vsel %vm303_vm15, %v385_v41, %v384_v39  ;;  %v493_v38 = vsel %vm1000_vm3, 0, %v491_v15  ;;  %v684_v32 = vmov 1983009808  }
  0x89   :  { %v389_v2 = vsel %vm968_vm0, %v735_v20, %v386_v0  ;;  %v514_v42 = vunpack.c.l.s4 %v684_v32  ;;  %v497_v54 = vand.u32 3, %v493_v38  ;;  %vm187_vm12 = vweird.f32 %v731_v18 }
  0x8a   :  { %vm561_vm1 = vcmp.lt.s32.totalorder %v560_v60, 0  ;;  %596 = vcosq.f32 %v389_v2  ;;  %vm290_vm13 = vweird.f32 %v733_v19  ;;  %vm393_vm0 = vweird.f32 %v735_v20 }
  0x8b   :  { %v475_v46 = vsel %vm561_vm1, 0, %v560_v60  ;;  %598 = vsinq.f32 %v389_v2  ;;  %v589_v3 = vpop.eup %588  ;;  %v515_v62 = vunpack.c.0.s8 %v514_v42  ;;  %vm502_vm15 = vcmp.eq.s32.totalorder %v497_v54, 2 }
  0x8c   :  { %v476_v5 = vsub.s32 32, %v475_v46  ;;  %v477_v8 = vshll.u32 %v468_v51, %v475_v46  ;;  %v480_v49 = vsub.s32 4294967266, %v475_v46  ;;  %v591_v40 = vpop.eup %590  ;;  %v194_v59 = vxor.u32 2147483648, %v589_v3 }
  0x8d   :  { %v593_v26 = vpop.eup %592  ;;  %v191_v31 = vxor.u32 2147483648, %v591_v40  ;;  %v394_v51 = vand.u32 3, %v390_v30  ;;  %vm499_vm1 = vcmp.eq.s32.totalorder %v497_v54, 0 }
  0x8e   :  { %v478_v9 = vshrl.u32 %v460_v23, %v476_v5  ;;  %v481_v10 = vadd.s32 127, %v480_v49  ;;  %v595_v28 = vpop.eup %594  ;;  %v297_v34 = vxor.u32 2147483648, %v593_v26  ;;  %v195_v37 = vsel %vm193_vm5, %v194_v59, %v591_v40 }
  0x8f   :  { %v294_v33 = vxor.u32 2147483648, %v595_v28  ;;  %v192_v61 = vsel %vm190_vm4, %v589_v3, %v191_v31  ;;  %vm396_vm10 = vcmp.eq.s32.totalorder %v394_v51, 0  ;;  %vm399_vm11 = vcmp.eq.s32.totalorder %v394_v51, 2 }
  0x90   :  { %v479_v12 = vor.u32 %v478_v9, %v477_v8  ;;  %v482_v35 = vshll.u32 %v481_v10, 23  ;;  %v298_v44 = vsel %vm296_vm7, %v297_v34, %v595_v28  ;;  %v196_v56 = vsel %vm189_vm8, %v192_v61, %v195_v37 }
  0x91   :  { %v295_v39 = vsel %vm293_vm6, %v593_v26, %v294_v33  ;;  %vm395_vm14 = vcmp.lt.s32.totalorder %v394_v51, 2  ;;  %v197_v47 = vsel %vm187_vm12, nan, %v196_v56  ;;  %v518_v49 = vsub.s32 %v515_v62, %v725_v1 }
  0x92   :  { %v483_v36 = vor.u32 4788187, %v482_v35  ;;  %v486_v53 = vcvt.s32.f32 %v479_v12  ;;  %v299_v21 = vsel %vm292_vm9, %v295_v39, %v298_v44 }
  0x93   :  { %v300_v63 = vsel %vm290_vm13, nan, %v299_v21 }
  0x94   :  { %v484_v16 = vand.u32 2147483647, %v483_v36  ;;  %v597_v4 = vpop.eup %596  ;;  %v511_v8 = vcombine.low %v197_v47, %v300_v63 }
  0x95   :  { %v599_v22 = vpop.eup %598  ;;  %v400_v50 = vxor.u32 2147483648, %v597_v4 }
  0x96   :  { %v487_v55 = vmul.f32 %v486_v53, %v484_v16  ;;  %v397_v43 = vxor.u32 2147483648, %v599_v22  ;;  %v519_v12 = vrot.slane %v511_v8, %v518_v49 }
  0x97   :  { %v401_v60 = vsel %vm399_vm11, %v400_v50, %v599_v22 }
  0x98   :  { %v488_v27 = vxor.u32 2147483648, %v487_v55  ;;  %v398_v41 = vsel %vm396_vm10, %v597_v4, %v397_v43 }
  0x99   :  { %v402_v0 = vsel %vm395_vm14, %v398_v41, %v401_v60 }
  0x9a   :  { %v489_v6 = vsel %vm406_vm2, %v488_v27, %v487_v55  ;;  %vm498_vm2 = vcmp.lt.s32.totalorder %v497_v54, 2  ;;  %v403_v9 = vsel %vm393_vm0, nan, %v402_v0 }
  0x9b   :  { %v492_v45 = vsel %vm1000_vm3, %v826_v24, %v489_v6  ;;  %vm496_vm3 = vweird.f32 %v826_v24 }
  0x9c   :  { %600 = vcosq.f32 %v492_v45 }
  0x9d   :  { %602 = vsinq.f32 %v492_v45 }
  0xa6   :  { %v601_v23 = vpop.eup %600 }
  0xa7   :  { %v603_v46 = vpop.eup %602  ;;  %v503_v5 = vxor.u32 2147483648, %v601_v23 }
  0xa8   :  { %v500_v18 = vxor.u32 2147483648, %v603_v46 }
  0xa9   :  { %v504_v19 = vsel %vm502_vm15, %v503_v5, %v603_v46 }
  0xaa   :  { %v501_v10 = vsel %vm499_vm1, %v601_v23, %v500_v18 }
  0xab   :  { %v505_v58 = vsel %vm498_vm2, %v501_v10, %v504_v19 }
  0xac   :  { %v506_v2 = vsel %vm496_vm3, nan, %v505_v58 }
  0xad   :  { %v512_v11 = vcombine.low %v403_v9, %v506_v2 }
  0xaf   :  { %v526_v20 = vrot.slane %v512_v11, %v518_v49 }
  0xb1   :  { %v527_v35 = vcombine.low %v519_v12, %v526_v20 }
  0xb3   :  { %529 = vst [vmem:[#allocation7] sm:$0xff] %v527_v35 }
  0xb4   :  { %659 = shalt.err (!%p656_p6)
}
  0xb5   :  { %s660_s8 = scalar_lea.hbm %s1037_s2, 128 }
  0xb6   :  { %p661_p7 = scmp.ne.s32.totalorder %s1037_s2, %s660_s8  ;;  %p664_p8 = scmp.lt.u32.totalorder %s660_s8, %s1037_s2 }
  0xb8   :  { %p666_p9 = pnand %p664_p8, %p661_p7 }
  0xba   :  { %669 = shalt.err (!%p666_p9)
}
  0xbb   :  { %539 = dma.vmem_to_hbm [thread:$0]  %s537_s4, 128, %s1037_s2, [#allocation4]  }
  0xbc   :  { %674 = dma.done.wait [#allocation4], 128  }
  0xbd   :  { %675 = vsyncadd [#allocation4], 4294967168 }
  0xbe   :  { %543 = vsyncpa [#allocation3], 1 }
  0xbf   :  { %544 = vsyncpa [#allocation6], 1 }
  0xc0   :  { %545 = vsyncpa [#allocation4], 1 }

</bundles_post_ra>
